<compile_context>
chip_gen: v7x
topology: tpu7x:2x2x1
jax: 0.10.0
libtpu: 0.0.40
codegen_flags: <defaults>
</compile_context>

<pallas_src>
import functools

import jax
import jax.numpy as jnp
from jax.experimental import pallas as pl
from jax.experimental.pallas import tpu as pltpu


def _ffn_kernel(x_ref, w1_ref, b1_ref, w2_ref, b2_ref, o_ref, acc_ref, *,
                dropout_rate, dropout_seed):
    # x_ref:  (tm, d_model)      current row tile
    # w1_ref: (d_model, tf)      column slice of W1
    # b1_ref: (1, tf)
    # w2_ref: (tf, d_model)      row slice of W2
    # b2_ref: (1, d_model)
    # o_ref:  (tm, d_model)
    # acc_ref:(tm, d_model) f32  accumulator, resident across the d_ff grid axis
    f = pl.program_id(1)

    @pl.when(f == 0)
    def _init():
        acc_ref[...] = jnp.zeros_like(acc_ref)

    # First matmul tile: (tm, D) @ (D, tf) -> (tm, tf) on the MXU, f32 acc.
    h = jnp.dot(x_ref[...], w1_ref[...], preferred_element_type=jnp.float32)
    h = h + b1_ref[...].astype(jnp.float32)
    h = jnp.maximum(h, 0.0)  # ReLU (VPU)

    if dropout_rate > 0.0:
        # Training-mode inverted dropout via the on-chip PRNG.  Statically
        # gated: not traced when dropout_rate == 0.0 (inference forward).
        pltpu.prng_seed(dropout_seed + pl.program_id(0) * 131071 + f)
        bits = pltpu.bitcast(pltpu.prng_random_bits(h.shape), jnp.uint32)
        thresh = jnp.uint32(int(dropout_rate * (2 ** 32)))
        keep = bits >= thresh
        h = jnp.where(keep, h * (1.0 / (1.0 - dropout_rate)), 0.0)

    # Second matmul tile: (tm, tf) @ (tf, D), accumulated over d_ff tiles.
    acc_ref[...] += jnp.dot(h.astype(w2_ref.dtype), w2_ref[...],
                            preferred_element_type=jnp.float32)

    @pl.when(f == pl.num_programs(1) - 1)
    def _finalize():
        o_ref[...] = (acc_ref[...] +
                      b2_ref[...].astype(jnp.float32)).astype(o_ref.dtype)


def _largest_divisor(n, cap):
    """Largest divisor of n that is <= cap (keeps blocks evenly tiling)."""
    t = max(1, min(n, cap))
    while t > 1 and n % t:
        t -= 1
    return t


def feed_forward(x, w1, b1, w2, b2, *, dropout_rate=0.0, dropout_seed=0,
                 block_rows=256, block_ff=512):
    """Pallas equivalent of FeedForward.forward for x of shape (B, S, d_model)."""
    B, S, D = x.shape
    d_ff = w1.shape[1]
    M = B * S

    x2d = x.reshape(M, D)
    b1_2d = b1.reshape(1, d_ff)
    b2_2d = b2.reshape(1, D)

    tm = _largest_divisor(M, block_rows)     # row tile (sublane axis)
    tf = _largest_divisor(d_ff, block_ff)    # hidden tile (lane axis, reduction)
    grid = (M // tm, d_ff // tf)

    kernel = functools.partial(_ffn_kernel,
                               dropout_rate=float(dropout_rate),
                               dropout_seed=int(dropout_seed))

    itemsize = jnp.dtype(x.dtype).itemsize
    cost = pl.CostEstimate(
        flops=4 * M * D * d_ff + M * d_ff,            # two matmuls + relu
        transcendentals=0,
        bytes_accessed=itemsize * (2 * M * D + 2 * D * d_ff + d_ff + D),
    )

    out2d = pl.pallas_call(
        kernel,
        out_shape=jax.ShapeDtypeStruct((M, D), x.dtype),
        grid_spec=pltpu.PrefetchScalarGridSpec(
            num_scalar_prefetch=0,
            grid=grid,
            in_specs=[
                pl.BlockSpec((tm, D), lambda i, f: (i, 0)),   # x rows
                pl.BlockSpec((D, tf), lambda i, f: (0, f)),   # W1 cols
                pl.BlockSpec((1, tf), lambda i, f: (0, f)),   # b1 slice
                pl.BlockSpec((tf, D), lambda i, f: (f, 0)),   # W2 rows
                pl.BlockSpec((1, D), lambda i, f: (0, 0)),    # b2
            ],
            out_specs=pl.BlockSpec((tm, D), lambda i, f: (i, 0)),
            scratch_shapes=[pltpu.VMEM((tm, D), jnp.float32)],
        ),
        compiler_params=pltpu.CompilerParams(
            dimension_semantics=("parallel", "arbitrary"),
        ),
        cost_estimate=cost,
    )(x2d, w1, b1_2d, w2, b2_2d)

    return out2d.reshape(B, S, D)


def feed_forward_reference(x, w1, b1, w2, b2):
    """Pure-JAX reference (eval-mode dropout == identity)."""
    h = jnp.maximum(jnp.dot(x, w1) + b1, 0.0)
    return jnp.dot(h, w2) + b2


if __name__ == "__main__":
    key = jax.random.PRNGKey(0)
    kx, k1, kb1, k2, kb2 = jax.random.split(key, 5)

    B, S, d_model, d_ff = 2, 8, 32, 256   # small shapes consistent with the module

    x = jax.random.normal(kx, (B, S, d_model), dtype=jnp.float32)
    # Weights stored pre-transposed vs. the PyTorch (out, in) convention.
    w1 = jax.random.normal(k1, (d_model, d_ff), dtype=jnp.float32) / jnp.sqrt(d_model)
    b1 = jax.random.normal(kb1, (d_ff,), dtype=jnp.float32) * 0.01
    w2 = jax.random.normal(k2, (d_ff, d_model), dtype=jnp.float32) / jnp.sqrt(d_ff)
    b2 = jax.random.normal(kb2, (d_model,), dtype=jnp.float32) * 0.01

    # TODO(synk): demo runs the deterministic (eval) forward; dropout_rate > 0
    # exercises the PRNG path but is not comparable against the reference.
    out = feed_forward(x, w1, b1, w2, b2, dropout_rate=0.0,
                       block_rows=8, block_ff=128)   # grid = (2, 2) at this shape
    out = jax.block_until_ready(out)

    ref = feed_forward_reference(x, w1, b1, w2, b2)
    assert out.shape == (B, S, d_model)
    rel_err = float(jnp.max(jnp.abs(out - ref)) / (jnp.max(jnp.abs(ref)) + 1e-6))
    assert rel_err < 2e-2, f"mismatch vs reference: rel-max err {rel_err}"

    print("KERNEL_OK")
</pallas_src>

<mosaic_0001>
module attributes {stable_mosaic.version = 11 : i64} {
  func.func @_ffn_kernel(%arg0: i32, %arg1: i32, %arg2: memref<8x32xf32, #tpu.memory_space<vmem>>, %arg3: memref<32x128xf32, #tpu.memory_space<vmem>>, %arg4: memref<1x128xf32, #tpu.memory_space<vmem>>, %arg5: memref<128x32xf32, #tpu.memory_space<vmem>>, %arg6: memref<1x32xf32, #tpu.memory_space<vmem>>, %arg7: memref<8x32xf32, #tpu.memory_space<vmem>>, %arg8: memref<8x32xf32, #tpu.memory_space<vmem>>) attributes {dimension_semantics = [#tpu.dimension_semantics<parallel>, #tpu.dimension_semantics<arbitrary>], iteration_bounds = array<i64: 2, 2>, scalar_prefetch = 0 : i64, scratch_operands = 1 : i64, tpu.core_type = #tpu.core_type<tc>, window_params = [{transform_indices = @transform_0, window_bounds = array<i64: 8, 32>}, {transform_indices = @transform_1, window_bounds = array<i64: 32, 128>}, {transform_indices = @transform_2, window_bounds = array<i64: 1, 128>}, {transform_indices = @transform_3, window_bounds = array<i64: 128, 32>}, {pipeline_mode = #tpu.pipeline_mode<synchronous>, transform_indices = @transform_4, window_bounds = array<i64: 1, 32>}, {transform_indices = @transform_5, window_bounds = array<i64: 8, 32>}]} {
    %c0_i32 = arith.constant 0 : i32
    %0 = arith.cmpi eq, %arg1, %c0_i32 : i32
    %1 = arith.extui %0 : i1 to i32
    %c0_i32_0 = arith.constant 0 : i32
    %2 = arith.cmpi ne, %1, %c0_i32_0 : i32
    scf.if %2 {
      %cst_15 = arith.constant 0.000000e+00 : f32
      %19 = vector.broadcast %cst_15 : f32 to vector<8x32xf32>
      %c0_16 = arith.constant 0 : index
      %c0_17 = arith.constant 0 : index
      %20 = vector.load %arg8[%c0_16, %c0_17] : memref<8x32xf32, #tpu.memory_space<vmem>>, vector<8x32xf32>
      tpu.vector_store %arg8[%c0_16, %c0_17], %19 {strides = array<i32>} : memref<8x32xf32, #tpu.memory_space<vmem>>, vector<8x32xf32>,
    } else {
    }
    %c0 = arith.constant 0 : index
    %c0_1 = arith.constant 0 : index
    %3 = vector.load %arg2[%c0, %c0_1] : memref<8x32xf32, #tpu.memory_space<vmem>>, vector<8x32xf32>
    %c0_2 = arith.constant 0 : index
    %c0_3 = arith.constant 0 : index
    %4 = vector.load %arg3[%c0_2, %c0_3] : memref<32x128xf32, #tpu.memory_space<vmem>>, vector<32x128xf32>
    %cst = arith.constant dense<0.000000e+00> : vector<8x128xf32>
    %5 = tpu.matmul %3, %4, %cst {dimension_numbers = #tpu.dot_dimension_numbers<[1], [0], [0], [1], [0, 0, 1, 1], [], []>} : vector<8x32xf32>, vector<32x128xf32>, vector<8x128xf32> -> vector<8x128xf32>
    %c0_4 = arith.constant 0 : index
    %c0_5 = arith.constant 0 : index
    %6 = vector.load %arg4[%c0_4, %c0_5] : memref<1x128xf32, #tpu.memory_space<vmem>>, vector<1x128xf32>
    %7 = vector.broadcast %6 : vector<1x128xf32> to vector<8x128xf32>
    %8 = arith.addf %5, %7 : vector<8x128xf32>
    %cst_6 = arith.constant 0.000000e+00 : f32
    %9 = vector.broadcast %cst_6 : f32 to vector<8x128xf32>
    %10 = arith.maximumf %8, %9 : vector<8x128xf32>
    %c0_7 = arith.constant 0 : index
    %c0_8 = arith.constant 0 : index
    %11 = vector.load %arg8[%c0_7, %c0_8] : memref<8x32xf32, #tpu.memory_space<vmem>>, vector<8x32xf32>
    %c0_9 = arith.constant 0 : index
    %c0_10 = arith.constant 0 : index
    %12 = vector.load %arg5[%c0_9, %c0_10] : memref<128x32xf32, #tpu.memory_space<vmem>>, vector<128x32xf32>
    %cst_11 = arith.constant dense<0.000000e+00> : vector<8x32xf32>
    %13 = tpu.matmul %10, %12, %cst_11 {dimension_numbers = #tpu.dot_dimension_numbers<[1], [0], [0], [1], [0, 0, 1, 1], [], []>} : vector<8x128xf32>, vector<128x32xf32>, vector<8x32xf32> -> vector<8x32xf32>
    %14 = arith.addf %11, %13 : vector<8x32xf32>
    %c0_12 = arith.constant 0 : index
    %c0_13 = arith.constant 0 : index
    %15 = vector.load %arg8[%c0_12, %c0_13] : memref<8x32xf32, #tpu.memory_space<vmem>>, vector<8x32xf32>
    tpu.vector_store %arg8[%c0_12, %c0_13], %14 {strides = array<i32>} : memref<8x32xf32, #tpu.memory_space<vmem>>, vector<8x32xf32>,
    %c1_i32 = arith.constant 1 : i32
    %16 = arith.cmpi eq, %arg1, %c1_i32 : i32
    %17 = arith.extui %16 : i1 to i32
    %c0_i32_14 = arith.constant 0 : i32
    %18 = arith.cmpi ne, %17, %c0_i32_14 : i32
    scf.if %18 {
      %c0_15 = arith.constant 0 : index
      %c0_16 = arith.constant 0 : index
      %19 = vector.load %arg8[%c0_15, %c0_16] : memref<8x32xf32, #tpu.memory_space<vmem>>, vector<8x32xf32>
      %c0_17 = arith.constant 0 : index
      %c0_18 = arith.constant 0 : index
      %20 = vector.load %arg6[%c0_17, %c0_18] : memref<1x32xf32, #tpu.memory_space<vmem>>, vector<1x32xf32>
      %21 = vector.broadcast %20 : vector<1x32xf32> to vector<8x32xf32>
      %22 = arith.addf %19, %21 : vector<8x32xf32>
      %c0_19 = arith.constant 0 : index
      %c0_20 = arith.constant 0 : index
      %23 = vector.load %arg7[%c0_19, %c0_20] : memref<8x32xf32, #tpu.memory_space<vmem>>, vector<8x32xf32>
      tpu.vector_store %arg7[%c0_19, %c0_20], %22 {strides = array<i32>} : memref<8x32xf32, #tpu.memory_space<vmem>>, vector<8x32xf32>,
    } else {
    }
    return
  }
  func.func @transform_0(%arg0: i32, %arg1: i32) -> (i32, i32) {
    %c0_i32 = arith.constant 0 : i32
    %c0_i32_0 = arith.constant 0 : i32
    return %arg0, %c0_i32 : i32, i32
  }
  func.func @transform_1(%arg0: i32, %arg1: i32) -> (i32, i32) {
    %c0_i32 = arith.constant 0 : i32
    %c0_i32_0 = arith.constant 0 : i32
    return %c0_i32, %arg1 : i32, i32
  }
  func.func @transform_2(%arg0: i32, %arg1: i32) -> (i32, i32) {
    %c0_i32 = arith.constant 0 : i32
    %c0_i32_0 = arith.constant 0 : i32
    return %c0_i32, %arg1 : i32, i32
  }
  func.func @transform_3(%arg0: i32, %arg1: i32) -> (i32, i32) {
    %c0_i32 = arith.constant 0 : i32
    %c0_i32_0 = arith.constant 0 : i32
    return %arg1, %c0_i32 : i32, i32
  }
  func.func @transform_4(%arg0: i32, %arg1: i32) -> (i32, i32) {
    %c0_i32 = arith.constant 0 : i32
    %c0_i32_0 = arith.constant 0 : i32
    %c0_i32_1 = arith.constant 0 : i32
    return %c0_i32, %c0_i32_0 : i32, i32
  }
  func.func @transform_5(%arg0: i32, %arg1: i32) -> (i32, i32) {
    %c0_i32 = arith.constant 0 : i32
    %c0_i32_0 = arith.constant 0 : i32
    return %arg0, %c0_i32 : i32, i32
  }
}

</mosaic_0001>

<bundles_post_ra>
// kernel: tpu_custom_call.1
= control target key start
LH: loop header
LB: loop body
LE: loop exit
PB: predicated region body
PF: predicated region fallthrough
CT: control target
= control target key end

     0   :  { %s1231_s0 = inlined_call_operand.vmem [shape: f32[16,32], index: 0, kind: input, shape index: {}]   ;;  %s1232_s1 = inlined_call_operand.vmem [shape: f32[32,256], index: 1, kind: input, shape index: {}]   ;;  %s1233_s2 = inlined_call_operand.vmem [shape: f32[1,256], index: 2, kind: input, shape index: {}]   ;;  %s1234_s3 = inlined_call_operand.vmem [shape: f32[256,32], index: 3, kind: input, shape index: {}]   ;;  %s1235_s4 = inlined_call_operand.vmem [shape: f32[1,32], index: 4, kind: input, shape index: {}]   ;;  %s1236_s5 = inlined_call_operand.hbm [shape: f32[16,32], index: 5, kind: output, shape index: {}]  }
   0x1   :  { %1243 = sst [smem:[#allocation14_spill]] %s1232_s1 }
   0x2   :  { %10 = vsyncpa [#allocation5], 0 }
   0x3   :  { %12 = vsyncpa [#allocation5 + $0x1], 0  ;;  %s1010_s18 = smov 0   ;;  %s1012_s19 = smov 0  }
   0x4   :  { %s1014_s20 = smov 0   ;;  %s1016_s21 = smov 0  }
   0x5   :  { %s1018_s22 = smov 0   ;;  %s1020_s23 = smov 0  }
   0x6   :  { %s1022_s24 = smov 0   ;;  %s1024_s25 = smov 0  }
   0x7   :  { %s1026_s26 = smov 0   ;;  %s1028_s27 = smov 0  }
   0x8 LB: > { %1244 = sst [smem:[#allocation7_spill]] %s953_s22  ;;  %s653_s28 = sadd.s32 4294967295, %s973_s27   ;;  %s973_s27 = sphi %s1028_s27, %s18_s27   ;;  %s969_s26 = sphi %s1026_s26, %s1266_s26   ;;  %s965_s25 = sphi %s1024_s25, %s1261_s25   ;;  %s961_s24 = sphi %s1022_s24, %s1260_s24   ;;  %s957_s23 = sphi %s1020_s23, %s1259_s23   ;;  %s953_s22 = sphi %s1018_s22, %s1258_s22   ;;  %s949_s21 = sphi %s1016_s21, %s1257_s21   ;;  %s945_s20 = sphi %s1014_s20, %s1265_s20   ;;  %s941_s19 = sphi %s1012_s19, %s1264_s19   ;;  %s937_s18 = sphi %s1010_s18, %s1263_s18  }
   0x9   : > { %1245 = sst [smem:[#allocation8_spill]] %s965_s25  ;;  %s654_s29 = sadd.s32 4294967294, %s973_s27  }
   0xa   : > { %1246 = sst [smem:[#allocation9_spill]] %s969_s26  ;;  %s27_s30 = sadd.s32 1, %s965_s25 }
   0xb   : > { %s30_s6 = sadd.s32 1, %s969_s26  ;;  %p28_p0 = scmp.ge.s32.totalorder %s27_s30, 2 }
   0xc   : > { %s63_s7 = sadd.s32 1, %s953_s22  ;;  %p70_p1 = scmp.ne.s32.totalorder %s953_s22, %s949_s21 }
   0xd   : > { %p71_p2 = scmp.eq.s32.totalorder %s973_s27, 0  ;;  %s1268_s30 = smov (%p28_p0, %s27_s30), 0 }
   0xe   : > { %1247 = sst [smem:[#allocation10_spill]] %s1268_s30  ;;  %s1270_s6 = smov (!%p28_p0, %s30_s6), %s969_s26 }
   0xf   : > { %s60_s8 = ssub.s32 %s965_s25, %s1268_s30  ;;  %p1073_p3 = por %p71_p2, %p70_p1 }
  0x10   : > { %p32_p4 = scmp.ge.s32.totalorder %s1270_s6, 2  ;;  %p61_p5 = scmp.eq.s32.totalorder %s60_s8, 0 }
  0x11   : > { %s162_s10 = sadd.s32 1, %s945_s20  ;;  %p172_p6 = scmp.ne.s32.totalorder %s945_s20, %s941_s19 }
  0x12   : > { %s1272_s6 = smov (%p32_p4, %s1270_s6), 0  ;;  %p173_p7 = scmp.eq.s32.totalorder %s653_s28, 3 }
  0x13   : > { %1249 = sst [smem:[#allocation11_spill]] %s1272_s6  ;;  %s159_s12 = ssub.s32 %s969_s26, %s1272_s6 }
  0x14   : > { %s1083_s11 = scalar_select %p61_p5, %s953_s22, %s63_s7  }
  0x15   : > { %p160_p8 = scmp.eq.s32.totalorder %s159_s12, 0  ;;  %p178_p9 = scmp.ne.s32.totalorder %s941_s19, %s937_s18 }
  0x16   : > { %1250 = sst [smem:[#allocation12_spill]] %s1083_s11  ;;  %p1089_p10 = por %p173_p7, %p172_p6 }
  0x17   : > { %p179_p11 = scmp.eq.s32.totalorder %s654_s29, 3  ;;  %p656_p13 = scmp.ge.s32.totalorder %s973_s27, 4 }
  0x18   : > { %s1094_s14 = scalar_select %p160_p8, %s945_s20, %s162_s10  }
  0x19   : > { %p1096_p12 = por %p179_p11, %p178_p9  ;;  %198 = sbr.rel (%p656_p13) target bundleno = 44 (0x2c), region = 20 }
  0x1a   : > { %1252 = sst [smem:[#allocation13_spill]] %s1094_s14 }
  0x20   : > { %208 = sbr.rel (!%p1073_p3) target bundleno = 44 (0x2c), region = 28  ;;  %s210_s16 = sand.u32 (%p1073_p3), 1, %s953_s22  }
  0x21   : > { %s658_s17 = sshll.u32 (%p1073_p3), %s965_s25, 3  ;;  %s657_s28 = sshll.u32 (%p1073_p3), %s210_s16, 5 }
  0x22   : > { %s1254_s1 = sld [smem:[#allocation14_spill]] (%p1073_p3)  ;;  %s212_s10 = scalar_lea.vmem (%p1073_p3), [#allocation3], %s657_s28 }
  0x28   : > { %s214_s29 = scalar_lea.vmem %s1254_s1, %s658_s17 }
  0x29   : > { %v248_v0 = vld [vmem:[%s214_s29] sm:$0xff]  ;;  %v250_v1 = vld [vmem:[%s214_s29 + $0x10] sm:$0xff] }
  0x2a   : > { %v252_v2 = vld [vmem:[%s214_s29 + $0x20] sm:$0xff]  ;;  %249 = vst [vmem:[%s212_s10] sm:$0xff] %v248_v0  ;;  %251 = vst [vmem:[%s212_s10 + $0x8] sm:$0xff] %v250_v1  ;;  %v254_v3 = vld [vmem:[%s214_s29 + $0x30] sm:$0xff] }
  0x2b   : > { %253 = vst [vmem:[%s212_s10 + $0x10] sm:$0xff] %v252_v2  ;;  %255 = vst [vmem:[%s212_s10 + $0x18] sm:$0xff] %v254_v3 }
  0x2c PF: > { %p659_p0 = scmp.ge.s32.totalorder %s973_s27, 1  ;;  %p275_p1 = scmp.lt.s32.totalorder %s973_s27, 5 }
  0x2e   : > { %p276_p2 = pnand %p659_p0, %p275_p1 }
  0x2f   : > { %s282_s9 = sand.u32 (!%p276_p2), 1, %s949_s21   ;;  %s1238_s12 = sand.u32 (!%p276_p2), 1, %s941_s19  }
  0x30   : > { %279 = sbr.rel (%p276_p2) target bundleno = 542 (0x21e), region = 74  ;;  %s660_s16 = sshll.u32 (!%p276_p2), %s282_s9, 5 }
  0x31   : > { %s1114_s17 = sshll.u32 (!%p276_p2), %s1238_s12, 3  ;;  %p321_p3 = scmp.lt.s32.totalorder (!%p276_p2), %s961_s24, 1 }
  0x32   : > { %p325_p4 = scmp.lt.s32.totalorder (!%p276_p2), %s957_s23, 1  ;;  %s663_s28 = sshll.u32 (!%p276_p2), %s957_s23, 4 }
  0x33   : > { %p329_p5 = scmp.lt.s32.totalorder (!%p276_p2), %s663_s28, 31  ;;  %s284_s22 = scalar_lea.vmem (!%p276_p2), [#allocation3], %s660_s16 }
  0x34   : > { %s320_s14 = scalar_lea.vmem (!%p276_p2), [#allocation4], %s1114_s17  ;;  %p665_p6 = scmp.ne.s32.totalorder (!%p276_p2), %s957_s23, 0 }
  0x37   : > { %s322_s7 = scalar_select %p321_p3, %s961_s24, 1 }
  0x38   : > { %s1121_s8 = scalar_select %p325_p4, %s957_s23, 1 }
  0x39   : > { %s662_s29 = sshll.u32 %s322_s7, 3  ;;  %s1274_s28 = smov (!%p329_p5, %s663_s28), 31  ;;  %vm338_vm0 = vcmask (!%p665_p6), 261120   ;;  %v975_v4 = vmov (!%p665_p6), 0.0  }
  0x3a   : > { %s1126_s6 = scalar_lea.vmem %s1231_s0, %s662_s29  ;;  %s327_s12 = scalar_lea.vmem %s1233_s2, %s1121_s8  ;;  %339 = vst.msk [vmem:[#allocation2] sm:$0xff] (!%p665_p6), %vm338_vm0, %v975_v4 }
  0x3b   : > { %s664_s30 = sshll.u32 %s1274_s28, 3  ;;  %337 = sbr.rel (%p665_p6) target bundleno = 66 (0x42), region = 82 }
  0x3c   : > { %s1135_s11 = scalar_lea.vmem %s1234_s3, %s664_s30 }
  0x42 PF: > { %v341_v5 = vld [vmem:[%s284_s22] sm:$0xff]  ;;  %v342_v6 = vld [vmem:[%s284_s22 + $0x8] sm:$0xff]  ;;  %v343_v7 = vld [vmem:[%s284_s22 + $0x10] sm:$0xff]  ;;  %v976_v8 = vmov 0.0|0.0   ;;  %vm977_vm1 = vmmov 0   ;;  %v978_v11 = vmov 0.0  }
  0x43   : > { %742 = vmatprep.subr.bf16.mxu0 %v976_v8  ;;  %v743_v9 = vpack.c.bf16 %v342_v6, %v341_v5  ;;  %v344_v10 = vld [vmem:[%s284_s22 + $0x18] sm:$0xff]  ;;  %704 = vmatprep.mubr.msk.f32.mxu0 %vm977_vm1, %v978_v11  ;;  %v429_v13 = vld [vmem:[%s1135_s11 + $0x8] sm:$0xff]  ;;  %v430_v14 = vld [vmem:[%s1135_s11 + $0x10] sm:$0xff]  ;;  %vm352_vm2 = vcmask 261120   ;;  %p668_p7 = scmp.ne.s32.totalorder %s957_s23, 1 }
  0x44   : > { %v428_v12 = vld [vmem:[%s1135_s11] sm:$0xff]  ;;  %748 = vmatprep.subr.bf16.mxu1 %v976_v8  ;;  %v431_v15 = vld [vmem:[%s1135_s11 + $0x18] sm:$0xff]  ;;  %739 = vmatprep.mubr.msk.f32.mxu1 %vm977_vm1, %v978_v11  ;;  %v746_v16 = vpack.c.bf16 %v344_v10, %v343_v7  ;;  %v433_v20 = vld [vmem:[%s1135_s11 + $0x28] sm:$0xff] }
  0x45   : > { %744 = vmatpush3.bf16.msra.mxu0 %v743_v9  ;;  %v749_v17 = vpack.c.bf16 %v429_v13, %v428_v12  ;;  %v752_v18 = vpack.c.bf16 %v431_v15, %v430_v14  ;;  %v432_v19 = vld [vmem:[%s1135_s11 + $0x20] sm:$0xff]  ;;  %v434_v23 = vld [vmem:[%s1135_s11 + $0x30] sm:$0xff]  ;;  %v435_v24 = vld [vmem:[%s1135_s11 + $0x38] sm:$0xff] }
  0x46   : > { %745 = vmatprep.subr.bf16.mxu0 %v976_v8  ;;  %v340_v21 = vld [vmem:[%s1126_s6] sm:$0xff]  ;;  %v755_v22 = vpack.c.bf16 %v433_v20, %v432_v19  ;;  %v758_v25 = vpack.c.bf16 %v435_v24, %v434_v23  ;;  %v437_v27 = vld [vmem:[%s1135_s11 + $0x48] sm:$0xff]  ;;  %v438_v29 = vld [vmem:[%s1135_s11 + $0x50] sm:$0xff] }
  0x47   : > { %750 = vmatpush3.bf16.msra.mxu1 %v749_v17  ;;  %v436_v26 = vld [vmem:[%s1135_s11 + $0x40] sm:$0xff]  ;;  %v439_v30 = vld [vmem:[%s1135_s11 + $0x58] sm:$0xff]  ;;  %v441_v33 = vld [vmem:[%s1135_s11 + $0x68] sm:$0xff] }
  0x48   : > { %751 = vmatprep.subr.bf16.mxu1 %v976_v8  ;;  %v761_v28 = vpack.c.bf16 %v437_v27, %v436_v26  ;;  %v764_v31 = vpack.c.bf16 %v439_v30, %v438_v29  ;;  %v440_v32 = vld [vmem:[%s1135_s11 + $0x60] sm:$0xff]  ;;  %v442_v35 = vld [vmem:[%s1135_s11 + $0x70] sm:$0xff]  ;;  %v443_v36 = vld [vmem:[%s1135_s11 + $0x78] sm:$0xff] }
  0x49   : > { %747 = vmatpush3.bf16.msra.mxu0 %v746_v16  ;;  %v767_v34 = vpack.c.bf16 %v441_v33, %v440_v32  ;;  %v770_v37 = vpack.c.bf16 %v443_v36, %v442_v35  ;;  %v666_v38 = vld [vmem:[%s327_s12] ss:$0 sm:$0xff] }
  0x4a   : > { %v427_v43 = vld [vmem:[#allocation2] sm:$0xff] }
  0x4b   : > { %753 = vmatpush3.bf16.msra.mxu1 %v752_v18  ;;  %v669_v48 = vld [vmem:[%s1235_s4] ss:$0 sm:$0xff] (!%p668_p7) }
  0x4c   : > { %705 = vmatmul.mubr.msk.f32.vlgmr.msra.gmra.mrb[0].mxu0 %vm352_vm2, %v340_v21  ;;  %754 = vmatprep.subr.bf16.mxu1 %v976_v8 }
  0x4f   : > { %756 = vmatpush3.bf16.msra.mxu1 %v755_v22 }
  0x50   : > { %757 = vmatprep.subr.bf16.mxu1 %v976_v8 }
  0x53   : > { %759 = vmatpush3.bf16.msra.mxu1 %v758_v25 }
  0x54   : > { %760 = vmatprep.subr.bf16.mxu1 %v976_v8 }
  0x57   : > { %762 = vmatpush3.bf16.msra.mxu1 %v761_v28 }
  0x58   : > { %763 = vmatprep.subr.bf16.mxu1 %v976_v8 }
  0x5b   : > { %765 = vmatpush3.bf16.msra.mxu1 %v764_v31 }
  0x5c   : > { %766 = vmatprep.subr.bf16.mxu1 %v976_v8 }
  0x5f   : > { %768 = vmatpush3.bf16.msra.mxu1 %v767_v34 }
  0x60   : > { %769 = vmatprep.subr.bf16.mxu1 %v976_v8 }
  0x63   : > { %771 = vmatpush3.bf16.msra.mxu1 %v770_v37 }
 0x11f   : > { %v422_v39 = vpop.f32.mrb[0].mxu0 }
 0x120   : > { %v423_v40 = vadd.f32 %v666_v38, %v422_v39  ;;  %v706_v41 = vpop.f32.mrb[1].mxu0 }
 0x122   : > { %v426_v42 = vmax.f32 %v423_v40, 0.0 }
 0x124   : > { %740 = vmatmul.mubr.f32.vlgmr.msra.gmra.mrb[0].mxu1 %v426_v42 }
 0x1f4   : > { %519 = sbr.rel (%p668_p7) target bundleno = 517 (0x205), region = 86 }
 0x1f7   : > { %v510_v44 = vpop.f32.mrb[0].mxu1 }
 0x1f8   : > { %v514_v45 = vadd.f32 %v510_v44, %v427_v43  ;;  %v741_v46 = vpop.f32.mrb[1].mxu1 }
 0x1fa   : > { %515 = vst.msk [vmem:[#allocation2] sm:$0xff] %vm352_vm2, %v514_v45 }
 0x201   : > { %v520_v47 = vld [vmem:[#allocation2] sm:$0xff] }
 0x202   : > { %v528_v49 = vadd.f32 %v669_v48, %v520_v47 }
 0x204   : > { %529 = vst.msk [vmem:[%s320_s14] sm:$0xff] %vm352_vm2, %v528_v49 }
 0x205 PF: > { %s671_s30 = sshll.u32 %s961_s24, 7  ;;  %s544_s12 = sshll.u32 %s320_s14, 4  ;;  %s545_s12 = int_to_ptr.vmem [resolvable:$true] %s544_s12 }
 0x206   : > { %s1174_s23 = scalar_lea.hbm %s1236_s5, %s671_s30  ;;  %s1255_s16 = sand.u32 1, %s941_s19  }
 0x207   : > { %s531_s28 = scalar_lea.sflag [#allocation5], %s1255_s16  ;;  %s863_s7 = scalar_lea.vmem %s545_s12, 128 }
 0x208   : > { %p864_p8 = scmp.ne.s32.totalorder %s545_s12, %s863_s7  ;;  %s979_s8 = smov [#allocation4]  }
 0x209   : > { %s867_s29 = sshll.u32 %s979_s8, 4  ;;  %s868_s29 = int_to_ptr.vmem [resolvable:$false] %s867_s29 }
 0x20a   : > { %p865_p9 = pnand %p864_p8, %p1089_p10  ;;  %s869_s10 = scalar_lea.vmem %s868_s29, 256 }
 0x20b   : > { %p870_p13 = scmp.lt.s32.totalorder %s545_s12, %s868_s29  ;;  %p871_p0 = scmp.lt.s32.totalorder %s869_s10, %s863_s7 }
 0x20c   : > { %p866_p11 = pneg %p865_p9 }
 0x20d   : > { %p872_p1 = por %p871_p0, %p870_p13 }
 0x20f   : > { %p873_p2 = pnand %p872_p1, %p866_p11 }
 0x211   : > { %876 = shalt.err (!%p873_p2)
}
 0x212   : > { %s877_s24 = scalar_lea.hbm %s1174_s23, 128  ;;  %s881_s21 = scalar_lea.hbm %s1236_s5, 256 }
 0x213   : > { %p878_p3 = scmp.ne.s32.totalorder %s1174_s23, %s877_s24  ;;  %p882_p6 = scmp.lt.u32.totalorder %s1174_s23, %s1236_s5 }
 0x214   : > { %p883_p7 = scmp.lt.u32.totalorder %s881_s21, %s877_s24  ;;  %p885_p9 = scmp.lt.u32.totalorder %s877_s24, %s1174_s23 }
 0x215   : > { %p879_p4 = pnand %p878_p3, %p1089_p10 }
 0x216   : > { %p884_p8 = por %p883_p7, %p882_p6 }
 0x217   : > { %p880_p5 = pneg %p879_p4 }
 0x218   : > { %p886_p11 = por %p885_p9, %p884_p8 }
 0x21a   : > { %p887_p13 = pnand %p886_p11, %p880_p5 }
 0x21c   : > { %890 = shalt.err (!%p887_p13)
}
 0x21d   : > { %772 = dma.vmem_to_hbm [thread:$0]  (%p1089_p10), %s545_s12, 128, %s1174_s23, %s531_s28  }
 0x21e PF: > { %p778_p0 = scmp.ge.s32.totalorder %s973_s27, 2  ;;  %s556_s22 = sand.u32 1, %s937_s18  }
 0x21f   : > { %s557_s25 = scalar_lea.sflag [#allocation5], %s556_s22 }
 0x220   : > { %p775_p1 = pnand %p778_p0, %p1096_p12 }
 0x222   : > { %932 = dma.done.wait (!%p775_p1), %s557_s25, 128  }
 0x223   : > { %934 = vsyncadd (!%p775_p1), %s557_s25, 4294967168  ;;  %s18_s27 = sadd.s32 1, %s973_s27   ;;  %s1256_s26 = sld [smem:[#allocation13_spill]] }
 0x224   : > { %p15_p2 = scmp.ge.s32.totalorder %s18_s27, 6   ;;  %s1257_s21 = sld [smem:[#allocation7_spill]] }
 0x225   : > { %s1258_s22 = sld [smem:[#allocation12_spill]]  ;;  %s1259_s23 = sld [smem:[#allocation8_spill]] }
 0x226   : > { %s1260_s24 = sld [smem:[#allocation9_spill]]  ;;  %s1261_s25 = sld [smem:[#allocation10_spill]] }
 0x227   : > { %s1262_s13 = sld [smem:[#allocation11_spill]]  ;;  %s1263_s18 = smov %s941_s19 }
 0x228   : > { %s1264_s19 = smov %s945_s20  ;;  %17 = sbr.rel (!%p15_p2) target bundleno = 8 (0x8), region = 135 }
 0x229   : > { %s1265_s20 = smov %s1256_s26 }
 0x22d   : > { %s1266_s26 = smov %s1262_s13 }
 0x22f   :  { %562 = vsyncpa [#allocation5], 1 }
 0x230   :  { %564 = vsyncpa [#allocation5 + $0x1], 1 }

</bundles_post_ra>
